<compile_context>
chip_gen: v5e
topology: v5e:2x2
jax: 0.10.0
libtpu: 0.0.40
codegen_flags: <defaults>
</compile_context>

<pallas_src>
import functools

import jax
import jax.numpy as jnp
from jax.experimental import pallas as pl
from jax.experimental.pallas import tpu as pltpu

_SUBLANE = 8  # vreg sublane width


def _round_up(x, m):
    return pl.cdiv(x, m) * m


def sub_actor_kernel(x_ref, w1_ref, b1_ref, w3_ref, b3_ref, w5_ref, b5_ref, out_ref):
    """Full 3-layer MLP for one batch tile. Matmuls accumulate in f32; bias/ReLU/tanh in f32."""
    w_dt = w1_ref.dtype            # compute dtype of the weights (f32 or bf16)
    x = x_ref[...].astype(w_dt)    # in-kernel cast (no-op on the f32 path)
    h1 = jnp.dot(x, w1_ref[...], preferred_element_type=jnp.float32) + b1_ref[...]
    h1 = jnp.maximum(h1, 0.0)
    h2 = jnp.dot(h1.astype(w_dt), w3_ref[...],
                 preferred_element_type=jnp.float32) + b3_ref[...]
    h2 = jnp.maximum(h2, 0.0)
    a = jnp.dot(h2.astype(w_dt), w5_ref[...],
                preferred_element_type=jnp.float32) + b5_ref[...]
    out_ref[...] = jnp.tanh(a)


def prepare_params(params, *, use_bf16=False):
    """One-time parameter prep (call once, outside the per-step forward):
    weights cast to the streamed compute dtype, biases kept f32."""
    w_dt = jnp.bfloat16 if use_bf16 else jnp.float32
    return {
        "w1": params["w1"].astype(w_dt), "b1": params["b1"].astype(jnp.float32),
        "w3": params["w3"].astype(w_dt), "b3": params["b3"].astype(jnp.float32),
        "w5": params["w5"].astype(w_dt), "b5": params["b5"].astype(jnp.float32),
    }


@functools.partial(jax.jit, static_argnames=("tb",))
def sub_actor_forward(state, params, *, tb=8192):
    """state: (B, n_states) float32. params: prepared dict of (in,out) weights and (1,out) biases."""
    B, n_states = state.shape
    n_actions = params["w5"].shape[1]

    # Batch tile: multiple of 8 sublanes, no wrapper-side padding of the state.
    TB = min(int(tb), int(_round_up(B, _SUBLANE)))
    if B >= 2 * _SUBLANE:
        # Keep grid >= 2 so ("parallel",) actually shards across TCs on v7x.
        TB = min(TB, int(_round_up(pl.cdiv(B, 2), _SUBLANE)))
    TB = int(_round_up(TB, _SUBLANE))
    grid = (int(pl.cdiv(B, TB)),)

    def resident(arr):
        # Full-array block; same (0,0) block every grid step -> stays VMEM-resident.
        return pl.BlockSpec(arr.shape, lambda i: (0, 0))

    out = pl.pallas_call(
        sub_actor_kernel,
        out_shape=jax.ShapeDtypeStruct((B, n_actions), jnp.float32),
        grid=grid,
        in_specs=[
            pl.BlockSpec((TB, n_states), lambda i: (i, 0)),  # streamed batch tile
            resident(params["w1"]), resident(params["b1"]),
            resident(params["w3"]), resident(params["b3"]),
            resident(params["w5"]), resident(params["b5"]),
        ],
        out_specs=pl.BlockSpec((TB, n_actions), lambda i: (i, 0)),
        compiler_params=pltpu.CompilerParams(
            dimension_semantics=("parallel",),
        ),
    )(state, params["w1"], params["b1"], params["w3"], params["b3"],
      params["w5"], params["b5"])

    return out


def init_params(key, n_states, n_actions, init_w=0.003):
    """Parameter init mirroring the PyTorch module: linear1 (n_states->32),
    linear3 (32->16), linear5 (16->n_actions) with U(-init_w, init_w).
    Weights are stored (in, out) == transpose of the torch (out, in) layout."""
    k1, k2, k3, k4, k5, k6 = jax.random.split(key, 6)

    def torch_default(k, fan_in, shape):
        bound = 1.0 / jnp.sqrt(fan_in)
        return jax.random.uniform(k, shape, jnp.float32, -bound, bound)

    w1 = torch_default(k1, n_states, (n_states, 32))
    b1 = torch_default(k2, n_states, (1, 32))
    w3 = torch_default(k3, 32, (32, 16))
    b3 = torch_default(k4, 32, (1, 16))
    w5 = jax.random.uniform(k5, (16, n_actions), jnp.float32, -init_w, init_w)
    b5 = jax.random.uniform(k6, (1, n_actions), jnp.float32, -init_w, init_w)
    return {"w1": w1, "b1": b1, "w3": w3, "b3": b3, "w5": w5, "b5": b5}


def reference_forward(state, p):
    h1 = jnp.maximum(state @ p["w1"] + p["b1"], 0.0)
    h2 = jnp.maximum(h1 @ p["w3"] + p["b3"], 0.0)
    return jnp.tanh(h2 @ p["w5"] + p["b5"])


if __name__ == "__main__":
    key = jax.random.PRNGKey(0)
    k_params, k_state1, k_state2 = jax.random.split(key, 3)

    n_states, n_actions = 32, 4
    raw_params = init_params(k_params, n_states, n_actions)
    params_f32 = prepare_params(raw_params, use_bf16=False)
    params_bf16 = prepare_params(raw_params, use_bf16=True)

    # 1) Small batch, f32 path (tight tolerance).
    batch = 8
    state = jax.random.normal(k_state1, (batch, n_states), jnp.float32)
    out = jax.block_until_ready(sub_actor_forward(state, params_f32))
    ref = reference_forward(state, raw_params)
    assert out.shape == (batch, n_actions)
    assert jnp.allclose(out, ref, atol=1e-5, rtol=1e-5), "f32 small-batch mismatch"

    # 2) Larger, non-tile-aligned batch exercising the grid + partial last block, f32.
    batch2 = 300
    state2 = jax.random.normal(k_state2, (batch2, n_states), jnp.float32)
    out2 = jax.block_until_ready(sub_actor_forward(state2, params_f32, tb=128))
    ref2 = reference_forward(state2, raw_params)
    assert out2.shape == (batch2, n_actions)
    assert jnp.allclose(out2, ref2, atol=1e-5, rtol=1e-5), "f32 gridded-batch mismatch"

    # 3) Default (large) tile on the same batch: grid collapses to 2 parallel steps.
    out2b = jax.block_until_ready(sub_actor_forward(state2, params_f32))
    assert jnp.allclose(out2b, ref2, atol=1e-5, rtol=1e-5), "f32 default-tile mismatch"

    # 4) bf16-weight path (f32 state streamed, cast in-kernel, f32 accumulate).
    out3 = jax.block_until_ready(sub_actor_forward(state2, params_bf16, tb=128))
    assert out3.shape == (batch2, n_actions)
    assert jnp.allclose(out3, ref2, atol=5e-2, rtol=5e-2), "bf16 path mismatch"

    print("KERNEL_OK")
</pallas_src>

<mosaic_0001>
module attributes {stable_mosaic.version = 11 : i64} {
  func.func @sub_actor_kernel(%arg0: i32, %arg1: memref<8x32xf32, #tpu.memory_space<vmem>>, %arg2: memref<32x32xf32, #tpu.memory_space<vmem>>, %arg3: memref<1x32xf32, #tpu.memory_space<vmem>>, %arg4: memref<32x16xf32, #tpu.memory_space<vmem>>, %arg5: memref<1x16xf32, #tpu.memory_space<vmem>>, %arg6: memref<16x4xf32, #tpu.memory_space<vmem>>, %arg7: memref<1x4xf32, #tpu.memory_space<vmem>>, %arg8: memref<8x4xf32, #tpu.memory_space<vmem>>) attributes {dimension_semantics = [#tpu.dimension_semantics<parallel>], iteration_bounds = array<i64: 1>, scalar_prefetch = 0 : i64, scratch_operands = 0 : i64, tpu.core_type = #tpu.core_type<tc>, window_params = [{transform_indices = @transform_0, window_bounds = array<i64: 8, 32>}, {pipeline_mode = #tpu.pipeline_mode<synchronous>, transform_indices = @transform_1, window_bounds = array<i64: 32, 32>}, {pipeline_mode = #tpu.pipeline_mode<synchronous>, transform_indices = @transform_2, window_bounds = array<i64: 1, 32>}, {pipeline_mode = #tpu.pipeline_mode<synchronous>, transform_indices = @transform_3, window_bounds = array<i64: 32, 16>}, {pipeline_mode = #tpu.pipeline_mode<synchronous>, transform_indices = @transform_4, window_bounds = array<i64: 1, 16>}, {pipeline_mode = #tpu.pipeline_mode<synchronous>, transform_indices = @transform_5, window_bounds = array<i64: 16, 4>}, {pipeline_mode = #tpu.pipeline_mode<synchronous>, transform_indices = @transform_6, window_bounds = array<i64: 1, 4>}, {transform_indices = @transform_7, window_bounds = array<i64: 8, 4>}]} {
    %c0 = arith.constant 0 : index
    %c0_0 = arith.constant 0 : index
    %0 = vector.load %arg1[%c0, %c0_0] : memref<8x32xf32, #tpu.memory_space<vmem>>, vector<8x32xf32>
    %c0_1 = arith.constant 0 : index
    %c0_2 = arith.constant 0 : index
    %1 = vector.load %arg2[%c0_1, %c0_2] : memref<32x32xf32, #tpu.memory_space<vmem>>, vector<32x32xf32>
    %cst = arith.constant dense<0.000000e+00> : vector<8x32xf32>
    %2 = tpu.matmul %0, %1, %cst {dimension_numbers = #tpu.dot_dimension_numbers<[1], [0], [0], [1], [0, 0, 1, 1], [], []>} : vector<8x32xf32>, vector<32x32xf32>, vector<8x32xf32> -> vector<8x32xf32>
    %c0_3 = arith.constant 0 : index
    %c0_4 = arith.constant 0 : index
    %3 = vector.load %arg3[%c0_3, %c0_4] : memref<1x32xf32, #tpu.memory_space<vmem>>, vector<1x32xf32>
    %4 = vector.broadcast %3 : vector<1x32xf32> to vector<8x32xf32>
    %5 = arith.addf %2, %4 : vector<8x32xf32>
    %cst_5 = arith.constant 0.000000e+00 : f32
    %6 = vector.broadcast %cst_5 : f32 to vector<8x32xf32>
    %7 = arith.maximumf %5, %6 : vector<8x32xf32>
    %c0_6 = arith.constant 0 : index
    %c0_7 = arith.constant 0 : index
    %8 = vector.load %arg4[%c0_6, %c0_7] : memref<32x16xf32, #tpu.memory_space<vmem>>, vector<32x16xf32>
    %cst_8 = arith.constant dense<0.000000e+00> : vector<8x16xf32>
    %9 = tpu.matmul %7, %8, %cst_8 {dimension_numbers = #tpu.dot_dimension_numbers<[1], [0], [0], [1], [0, 0, 1, 1], [], []>} : vector<8x32xf32>, vector<32x16xf32>, vector<8x16xf32> -> vector<8x16xf32>
    %c0_9 = arith.constant 0 : index
    %c0_10 = arith.constant 0 : index
    %10 = vector.load %arg5[%c0_9, %c0_10] : memref<1x16xf32, #tpu.memory_space<vmem>>, vector<1x16xf32>
    %11 = vector.broadcast %10 : vector<1x16xf32> to vector<8x16xf32>
    %12 = arith.addf %9, %11 : vector<8x16xf32>
    %cst_11 = arith.constant 0.000000e+00 : f32
    %13 = vector.broadcast %cst_11 : f32 to vector<8x16xf32>
    %14 = arith.maximumf %12, %13 : vector<8x16xf32>
    %c0_12 = arith.constant 0 : index
    %c0_13 = arith.constant 0 : index
    %15 = vector.load %arg6[%c0_12, %c0_13] : memref<16x4xf32, #tpu.memory_space<vmem>>, vector<16x4xf32>
    %cst_14 = arith.constant dense<0.000000e+00> : vector<8x4xf32>
    %16 = tpu.matmul %14, %15, %cst_14 {dimension_numbers = #tpu.dot_dimension_numbers<[1], [0], [0], [1], [0, 0, 1, 1], [], []>} : vector<8x16xf32>, vector<16x4xf32>, vector<8x4xf32> -> vector<8x4xf32>
    %c0_15 = arith.constant 0 : index
    %c0_16 = arith.constant 0 : index
    %17 = vector.load %arg7[%c0_15, %c0_16] : memref<1x4xf32, #tpu.memory_space<vmem>>, vector<1x4xf32>
    %18 = vector.broadcast %17 : vector<1x4xf32> to vector<8x4xf32>
    %19 = arith.addf %16, %18 : vector<8x4xf32>
    %20 = math.tanh %19 : vector<8x4xf32>
    %c0_17 = arith.constant 0 : index
    %c0_18 = arith.constant 0 : index
    %21 = vector.load %arg8[%c0_17, %c0_18] : memref<8x4xf32, #tpu.memory_space<vmem>>, vector<8x4xf32>
    tpu.vector_store %arg8[%c0_17, %c0_18], %20 {strides = array<i32>} : memref<8x4xf32, #tpu.memory_space<vmem>>, vector<8x4xf32>,
    return
  }
  func.func @transform_0(%arg0: i32) -> (i32, i32) {
    %c0_i32 = arith.constant 0 : i32
    %c0_i32_0 = arith.constant 0 : i32
    return %arg0, %c0_i32 : i32, i32
  }
  func.func @transform_1(%arg0: i32) -> (i32, i32) {
    %c0_i32 = arith.constant 0 : i32
    %c0_i32_0 = arith.constant 0 : i32
    %c0_i32_1 = arith.constant 0 : i32
    return %c0_i32, %c0_i32_0 : i32, i32
  }
  func.func @transform_2(%arg0: i32) -> (i32, i32) {
    %c0_i32 = arith.constant 0 : i32
    %c0_i32_0 = arith.constant 0 : i32
    %c0_i32_1 = arith.constant 0 : i32
    return %c0_i32, %c0_i32_0 : i32, i32
  }
  func.func @transform_3(%arg0: i32) -> (i32, i32) {
    %c0_i32 = arith.constant 0 : i32
    %c0_i32_0 = arith.constant 0 : i32
    %c0_i32_1 = arith.constant 0 : i32
    return %c0_i32, %c0_i32_0 : i32, i32
  }
  func.func @transform_4(%arg0: i32) -> (i32, i32) {
    %c0_i32 = arith.constant 0 : i32
    %c0_i32_0 = arith.constant 0 : i32
    %c0_i32_1 = arith.constant 0 : i32
    return %c0_i32, %c0_i32_0 : i32, i32
  }
  func.func @transform_5(%arg0: i32) -> (i32, i32) {
    %c0_i32 = arith.constant 0 : i32
    %c0_i32_0 = arith.constant 0 : i32
    %c0_i32_1 = arith.constant 0 : i32
    return %c0_i32, %c0_i32_0 : i32, i32
  }
  func.func @transform_6(%arg0: i32) -> (i32, i32) {
    %c0_i32 = arith.constant 0 : i32
    %c0_i32_0 = arith.constant 0 : i32
    %c0_i32_1 = arith.constant 0 : i32
    return %c0_i32, %c0_i32_0 : i32, i32
  }
  func.func @transform_7(%arg0: i32) -> (i32, i32) {
    %c0_i32 = arith.constant 0 : i32
    %c0_i32_0 = arith.constant 0 : i32
    return %arg0, %c0_i32 : i32, i32
  }
}

</mosaic_0001>

<bundles_post_ra>
// kernel: sub_actor_forward.1
= control target key start
LH: loop header
LB: loop body
LE: loop exit
PB: predicated region body
PF: predicated region fallthrough
CT: control target
= control target key end

     0   :  { %vm35_vm0 = vcmask 261120   ;;  %vm98_vm1 = vcmask 130048   ;;  %vm123_vm2 = vcmask 31744   ;;  %s222_s1 = inlined_call_operand.vmem [shape: f32[32,32], index: 1, kind: input, shape index: {}]   ;;  %s223_s3 = inlined_call_operand.vmem [shape: f32[32,16], index: 3, kind: input, shape index: {}]   ;;  %s224_s2 = inlined_call_operand.vmem [shape: f32[1,32], index: 2, kind: input, shape index: {}]   ;;  %s225_s0 = inlined_call_operand.vmem [shape: f32[8,32], index: 0, kind: input, shape index: {}]   ;;  %s226_s4 = inlined_call_operand.vmem [shape: f32[1,16], index: 4, kind: input, shape index: {}]   ;;  %s227_s6 = inlined_call_operand.vmem [shape: f32[1,4], index: 6, kind: input, shape index: {}]   ;;  %s228_s5 = inlined_call_operand.vmem [shape: f32[16,4], index: 5, kind: input, shape index: {}]   ;;  %s229_s7 = inlined_call_operand.vmem [shape: f32[8,4], index: 7, kind: output, shape index: {}]  }
   0x1   :  { %v30_v0 = vld [vmem:[%s222_s1 + $0x18] sm:$0xff]  ;;  %v29_v1 = vld [vmem:[%s222_s1 + $0x10] sm:$0xff]  ;;  %v28_v3 = vld [vmem:[%s222_s1 + $0x8] sm:$0xff] }
   0x2   :  { %51 = vmatpush.msra.mxu0 %v30_v0  ;;  %v63_v2 = vld [vmem:[%s223_s3 + $0x18] sm:$0xff]  ;;  %v27_v4 = vld [vmem:[%s222_s1] sm:$0xff]  ;;  %v62_v6 = vld [vmem:[%s223_s3 + $0x10] sm:$0xff] }
   0x3   :  { %83 = vmatpush.msra.mxu1 %v63_v2  ;;  %v26_v5 = vld [vmem:[%s225_s0] sm:$0xff]  ;;  %v61_v7 = vld [vmem:[%s223_s3 + $0x8] sm:$0xff] }
   0x4   :  { %52 = vmatpush.msra.mxu0 %v29_v1  ;;  %v60_v8 = vld [vmem:[%s223_s3] sm:$0xff]  ;;  %v93_v13 = vld [vmem:[%s228_s5 + $0x8] sm:$0xff] }
   0x5   :  { %84 = vmatpush.msra.mxu1 %v62_v6  ;;  %v132_v9 = vld [vmem:[%s224_s2] ss:$0 sm:$0xff]  ;;  %116 = vmatpush.msra.mxu2 %v93_v13 }
   0x6   :  { %53 = vmatpush.msra.mxu0 %v28_v3  ;;  %v92_v14 = vld [vmem:[%s228_s5] sm:$0xff] }
   0x7   :  { %85 = vmatpush.msra.mxu1 %v61_v7  ;;  %117 = vmatpush.msra.mxu2 %v92_v14  ;;  %v133_v15 = vld [vmem:[%s226_s4] ss:$0 sm:$0xff] }
   0x8   :  { %54 = vmatpush.msra.mxu0 %v27_v4  ;;  %v134_v19 = vld [vmem:[%s227_s6] ss:$0 sm:$0xff] }
   0x9   :  { %129 = vmatmul.msk.f32.vlgmr.msra.gmra.mxu0 %vm35_vm0, %v26_v5  ;;  %86 = vmatpush.msra.mxu1 %v60_v8 }
  0x86   :  { %v56_v10 = vpop.f32.mrf.mxu0 }
  0x87   :  { %v57_v11 = vadd.f32 %v132_v9, %v56_v10 }
  0x89   :  { %v59_v12 = vmax.f32 %v57_v11, 0.0 }
  0x8b   :  { %130 = vmatmul.msk.f32.vlgmr.msra.gmra.mxu1 %vm35_vm0, %v59_v12 }
 0x108   :  { %v88_v16 = vpop.f32.mrf.mxu1 }
 0x109   :  { %v89_v17 = vadd.f32 %v133_v15, %v88_v16 }
 0x10b   :  { %v91_v18 = vmax.f32 %v89_v17, 0.0 }
 0x10d   :  { %131 = vmatmul.msk.f32.vlgmr.msra.gmra.mxu2 %vm98_vm1, %v91_v18 }
 0x190   :  { %v119_v20 = vpop.f32.mrf.mxu2 }
 0x191   :  { %v120_v21 = vadd.f32 %v134_v19, %v119_v20 }
 0x193   :  { %135 = vtanh.f32 %v120_v21 }
 0x199   :  { %v136_v22 = vpop.eup %135 }
 0x19a   :  { %124 = vst.msk [vmem:[%s229_s7] sm:$0xff] %vm123_vm2, %v136_v22 }

</bundles_post_ra>
